<compile_context>
chip_gen: v7x
topology: tpu7x:2x2x1
jax: 0.10.0
libtpu: 0.0.40
codegen_flags: <defaults>
</compile_context>

<pallas_src>
import jax
import jax.numpy as jnp
from jax.experimental import pallas as pl
from jax.experimental.pallas import tpu as pltpu


def _round_up(x, m):
    return ((x + m - 1) // m) * m


def _tensorcores_per_chip():
    """2 for TPU generations exposing two TensorCores behind one device, else 1."""
    try:
        kind = str(getattr(jax.devices()[0], "device_kind", "")).lower()
    except Exception:
        return 1
    if "v7" in kind or "v4" in kind or "v5p" in kind:
        return 2
    return 1   # v5e / v6e: single TensorCore -> grid is a serial loop


def _mlp_tanh_kernel(x_ref, w1_ref, b1_ref, w2_ref, b2_ref, o_ref):
    # Fused hot path: tanh -> matmul(+bias) -> tanh -> matmul(+bias) -> residual.
    # Weights/biases are the (block-diagonal / tiled) packed versions, so the
    # math is identical per F-lane chunk of each packed row.  If the packed
    # weights were stored in bf16 the tanh outputs (|h|<=1) are cast to bf16
    # before hitting the MXU; the accumulator stays f32.
    x = x_ref[...].astype(jnp.float32)
    h = jnp.tanh(x)
    h = jnp.dot(h.astype(w1_ref.dtype), w1_ref[...],
                preferred_element_type=jnp.float32) + b1_ref[...]
    h = jnp.tanh(h)
    h = jnp.dot(h.astype(w2_ref.dtype), w2_ref[...],
                preferred_element_type=jnp.float32) + b2_ref[...]
    o_ref[...] = (x + h).astype(o_ref.dtype)


def pack_mlp_tanh_params(w1, b1, w2, b2, *, use_bf16_matmul=False):
    """Pack weights once (hoist out of the per-call path).

    w1: (F, H), b1: (H,), w2: (H, H), b2: (H,).  Requires F == H (residual).
    Returns ((w1p, b1p, w2p, b2p), meta) with meta = dict(P, F, Fp, W).
    """
    F, H = w1.shape
    assert w2.shape == (H, H) and b1.shape == (H,) and b2.shape == (H,)
    assert F == H, "residual connect ('resid') requires in_features == out_features"

    if 128 % F == 0:                       # F divides 128: lane-pack P rows per 128-wide row
        P, Fp = 128 // F, F
    else:                                  # fallback: pad feature dim to a lane-dense width
        P, Fp = 1, _round_up(F, 128)
    W = P * Fp

    if Fp != F:
        w1 = jnp.pad(w1, ((0, Fp - F), (0, Fp - F)))
        w2 = jnp.pad(w2, ((0, Fp - F), (0, Fp - F)))
        b1 = jnp.pad(b1, (0, Fp - F))
        b2 = jnp.pad(b2, (0, Fp - F))

    eye = jnp.eye(P, dtype=w1.dtype)
    w1p = jnp.kron(eye, w1)                # (W, W) block-diagonal
    w2p = jnp.kron(eye, w2)                # (W, W) block-diagonal
    if use_bf16_matmul:
        w1p = w1p.astype(jnp.bfloat16)
        w2p = w2p.astype(jnp.bfloat16)
    b1p = jnp.tile(b1, P).reshape(1, W).astype(jnp.float32)
    b2p = jnp.tile(b2, P).reshape(1, W).astype(jnp.float32)

    return (w1p, b1p, w2p, b2p), dict(P=P, F=F, Fp=Fp, W=W)


def mlp_tanh_packed(x, w1p, b1p, w2p, b2p, *, P, F, Fp, tile_m=2048):
    """x: (B, S, F); packed params from pack_mlp_tanh_params."""
    B, S, Fx = x.shape
    assert Fx == F
    W = P * Fp
    N = B * S

    # ---- Lane-dense packing: fold P rows into one W-wide packed row --------
    x2d = x.reshape(N, F)
    if Fp != F:                                    # rare fallback path
        x2d = jnp.pad(x2d, ((0, 0), (0, Fp - F)))
    Np = -(-N // P)                                # packed rows holding real data
    pad_rows = Np * P - N                          # <= P-1; usually 0
    if pad_rows:
        x2d = jnp.pad(x2d, ((0, pad_rows), (0, 0)))
    xp = x2d.reshape(Np, W)

    # ---- Grid / tile sizing: partial last block instead of row padding -----
    tile_cap = max(8, _round_up(int(tile_m), 8))
    num_tc = _tensorcores_per_chip()
    if Np <= tile_cap and (num_tc < 2 or Np <= 8):
        tile = Np                                  # single block == full array dims
    else:
        steps = pl.cdiv(Np, min(tile_cap, Np))
        if num_tc >= 2:
            # even step count -> clean 2x split across the two TensorCores
            steps = max(num_tc, _round_up(steps, num_tc))
        tile = max(8, _round_up(-(-Np // steps), 8))
    grid = (pl.cdiv(Np, tile),)

    out = pl.pallas_call(
        _mlp_tanh_kernel,
        out_shape=jax.ShapeDtypeStruct((Np, W), x.dtype),
        grid_spec=pltpu.PrefetchScalarGridSpec(
            num_scalar_prefetch=0,
            grid=grid,
            in_specs=[
                pl.BlockSpec((tile, W), lambda i: (i, 0)),   # packed x rows, tiled
                pl.BlockSpec((W, W), lambda i: (0, 0)),      # W1 (block-diag), resident
                pl.BlockSpec((1, W), lambda i: (0, 0)),      # b1 (tiled)
                pl.BlockSpec((W, W), lambda i: (0, 0)),      # W2 (block-diag), resident
                pl.BlockSpec((1, W), lambda i: (0, 0)),      # b2 (tiled)
            ],
            out_specs=pl.BlockSpec((tile, W), lambda i: (i, 0)),
        ),
        compiler_params=pltpu.CompilerParams(
            dimension_semantics=("parallel",),
        ),
    )(xp, w1p, b1p, w2p, b2p)

    out2d = out.reshape(Np * P, Fp)
    if pad_rows:
        out2d = out2d[:N]
    if Fp != F:
        out2d = out2d[:, :F]
    return out2d.reshape(B, S, F)


def make_mlp_tanh(w1, b1, w2, b2, *, tile_m=2048, use_bf16_matmul=False):
    """Pack params once, return a jitted x -> MLPTanh(x) callable."""
    (w1p, b1p, w2p, b2p), meta = pack_mlp_tanh_params(
        w1, b1, w2, b2, use_bf16_matmul=use_bf16_matmul)

    @jax.jit
    def _run(x, w1p, b1p, w2p, b2p):
        return mlp_tanh_packed(x, w1p, b1p, w2p, b2p,
                               P=meta["P"], F=meta["F"], Fp=meta["Fp"],
                               tile_m=tile_m)

    return lambda x: _run(x, w1p, b1p, w2p, b2p)


def mlp_tanh(x, w1, b1, w2, b2, *, tile_m=2048, use_bf16_matmul=False):
    """Convenience one-shot wrapper (packs params on every call)."""
    (w1p, b1p, w2p, b2p), meta = pack_mlp_tanh_params(
        w1, b1, w2, b2, use_bf16_matmul=use_bf16_matmul)
    return mlp_tanh_packed(x, w1p, b1p, w2p, b2p,
                           P=meta["P"], F=meta["F"], Fp=meta["Fp"], tile_m=tile_m)


def reference(x, w1, b1, w2, b2):
    h = jnp.tanh(x)
    h = h @ w1 + b1
    h = jnp.tanh(h)
    h = h @ w2 + b2
    return x + h


if __name__ == "__main__":
    B, S, F = 2, 8, 32     # batch, set size, features (in_features == out_features)
    H = F

    key = jax.random.PRNGKey(0)
    k_x, k_w1, k_b1, k_w2, k_b2 = jax.random.split(key, 5)

    x = jax.random.normal(k_x, (B, S, F), dtype=jnp.float32)
    # nn.Linear-style init (uniform +-1/sqrt(fan_in)), stored as (in, out)
    bound1 = 1.0 / (F ** 0.5)
    w1 = jax.random.uniform(k_w1, (F, H), minval=-bound1, maxval=bound1, dtype=jnp.float32)
    b1 = jax.random.uniform(k_b1, (H,), minval=-bound1, maxval=bound1, dtype=jnp.float32)
    bound2 = 1.0 / (H ** 0.5)
    w2 = jax.random.uniform(k_w2, (H, H), minval=-bound2, maxval=bound2, dtype=jnp.float32)
    b2 = jax.random.uniform(k_b2, (H,), minval=-bound2, maxval=bound2, dtype=jnp.float32)

    fwd = make_mlp_tanh(w1, b1, w2, b2)          # pack weights once, jit the hot path
    out = fwd(x)
    out = jax.block_until_ready(out)

    ref = reference(x, w1, b1, w2, b2)
    assert out.shape == (B, S, H)
    assert jnp.allclose(out, ref, atol=1e-5, rtol=1e-5), "mismatch vs reference"

    print("KERNEL_OK")
</pallas_src>

<mosaic_0001>
module attributes {stable_mosaic.version = 11 : i64} {
  func.func @_mlp_tanh_kernel(%arg0: i32, %arg1: memref<4x128xf32, #tpu.memory_space<vmem>>, %arg2: memref<128x128xf32, #tpu.memory_space<vmem>>, %arg3: memref<1x128xf32, #tpu.memory_space<vmem>>, %arg4: memref<128x128xf32, #tpu.memory_space<vmem>>, %arg5: memref<1x128xf32, #tpu.memory_space<vmem>>, %arg6: memref<4x128xf32, #tpu.memory_space<vmem>>) attributes {dimension_semantics = [#tpu.dimension_semantics<parallel>], iteration_bounds = array<i64: 1>, scalar_prefetch = 0 : i64, scratch_operands = 0 : i64, tpu.core_type = #tpu.core_type<tc>, window_params = [{transform_indices = @transform_0, window_bounds = array<i64: 4, 128>}, {pipeline_mode = #tpu.pipeline_mode<synchronous>, transform_indices = @transform_1, window_bounds = array<i64: 128, 128>}, {pipeline_mode = #tpu.pipeline_mode<synchronous>, transform_indices = @transform_2, window_bounds = array<i64: 1, 128>}, {pipeline_mode = #tpu.pipeline_mode<synchronous>, transform_indices = @transform_3, window_bounds = array<i64: 128, 128>}, {pipeline_mode = #tpu.pipeline_mode<synchronous>, transform_indices = @transform_4, window_bounds = array<i64: 1, 128>}, {transform_indices = @transform_5, window_bounds = array<i64: 4, 128>}]} {
    %c0 = arith.constant 0 : index
    %c0_0 = arith.constant 0 : index
    %0 = vector.load %arg1[%c0, %c0_0] : memref<4x128xf32, #tpu.memory_space<vmem>>, vector<4x128xf32>
    %1 = math.tanh %0 : vector<4x128xf32>
    %c0_1 = arith.constant 0 : index
    %c0_2 = arith.constant 0 : index
    %2 = vector.load %arg2[%c0_1, %c0_2] : memref<128x128xf32, #tpu.memory_space<vmem>>, vector<128x128xf32>
    %cst = arith.constant dense<0.000000e+00> : vector<4x128xf32>
    %3 = tpu.matmul %1, %2, %cst {dimension_numbers = #tpu.dot_dimension_numbers<[1], [0], [0], [1], [0, 0, 1, 1], [], []>} : vector<4x128xf32>, vector<128x128xf32>, vector<4x128xf32> -> vector<4x128xf32>
    %c0_3 = arith.constant 0 : index
    %c0_4 = arith.constant 0 : index
    %4 = vector.load %arg3[%c0_3, %c0_4] : memref<1x128xf32, #tpu.memory_space<vmem>>, vector<1x128xf32>
    %5 = vector.broadcast %4 : vector<1x128xf32> to vector<4x128xf32>
    %6 = arith.addf %3, %5 : vector<4x128xf32>
    %7 = math.tanh %6 : vector<4x128xf32>
    %c0_5 = arith.constant 0 : index
    %c0_6 = arith.constant 0 : index
    %8 = vector.load %arg4[%c0_5, %c0_6] : memref<128x128xf32, #tpu.memory_space<vmem>>, vector<128x128xf32>
    %cst_7 = arith.constant dense<0.000000e+00> : vector<4x128xf32>
    %9 = tpu.matmul %7, %8, %cst_7 {dimension_numbers = #tpu.dot_dimension_numbers<[1], [0], [0], [1], [0, 0, 1, 1], [], []>} : vector<4x128xf32>, vector<128x128xf32>, vector<4x128xf32> -> vector<4x128xf32>
    %c0_8 = arith.constant 0 : index
    %c0_9 = arith.constant 0 : index
    %10 = vector.load %arg5[%c0_8, %c0_9] : memref<1x128xf32, #tpu.memory_space<vmem>>, vector<1x128xf32>
    %11 = vector.broadcast %10 : vector<1x128xf32> to vector<4x128xf32>
    %12 = arith.addf %9, %11 : vector<4x128xf32>
    %13 = arith.addf %0, %12 : vector<4x128xf32>
    %c0_10 = arith.constant 0 : index
    %c0_11 = arith.constant 0 : index
    %14 = vector.load %arg6[%c0_10, %c0_11] : memref<4x128xf32, #tpu.memory_space<vmem>>, vector<4x128xf32>
    tpu.vector_store %arg6[%c0_10, %c0_11], %13 {strides = array<i32>} : memref<4x128xf32, #tpu.memory_space<vmem>>, vector<4x128xf32>,
    return
  }
  func.func @transform_0(%arg0: i32) -> (i32, i32) {
    %c0_i32 = arith.constant 0 : i32
    %c0_i32_0 = arith.constant 0 : i32
    return %arg0, %c0_i32 : i32, i32
  }
  func.func @transform_1(%arg0: i32) -> (i32, i32) {
    %c0_i32 = arith.constant 0 : i32
    %c0_i32_0 = arith.constant 0 : i32
    %c0_i32_1 = arith.constant 0 : i32
    return %c0_i32, %c0_i32_0 : i32, i32
  }
  func.func @transform_2(%arg0: i32) -> (i32, i32) {
    %c0_i32 = arith.constant 0 : i32
    %c0_i32_0 = arith.constant 0 : i32
    %c0_i32_1 = arith.constant 0 : i32
    return %c0_i32, %c0_i32_0 : i32, i32
  }
  func.func @transform_3(%arg0: i32) -> (i32, i32) {
    %c0_i32 = arith.constant 0 : i32
    %c0_i32_0 = arith.constant 0 : i32
    %c0_i32_1 = arith.constant 0 : i32
    return %c0_i32, %c0_i32_0 : i32, i32
  }
  func.func @transform_4(%arg0: i32) -> (i32, i32) {
    %c0_i32 = arith.constant 0 : i32
    %c0_i32_0 = arith.constant 0 : i32
    %c0_i32_1 = arith.constant 0 : i32
    return %c0_i32, %c0_i32_0 : i32, i32
  }
  func.func @transform_5(%arg0: i32) -> (i32, i32) {
    %c0_i32 = arith.constant 0 : i32
    %c0_i32_0 = arith.constant 0 : i32
    return %arg0, %c0_i32 : i32, i32
  }
}

</mosaic_0001>

<bundles_post_ra>
// kernel: _run.1
= control target key start
LH: loop header
LB: loop body
LE: loop exit
PB: predicated region body
PF: predicated region fallthrough
CT: control target
= control target key end

     0   :  { %10 = vsyncpa [#allocation3], 0  ;;  %s547_s0 = inlined_call_operand.vmem [shape: f32[4,128], index: 0, kind: input, shape index: {}]   ;;  %s548_s1 = inlined_call_operand.hbm [shape: f32[128,128], index: 1, kind: input, shape index: {}]   ;;  %s549_s2 = inlined_call_operand.vmem [shape: f32[1,128], index: 2, kind: input, shape index: {}]   ;;  %s550_s3 = inlined_call_operand.hbm [shape: f32[128,128], index: 3, kind: input, shape index: {}]   ;;  %s551_s4 = inlined_call_operand.vmem [shape: f32[1,128], index: 4, kind: input, shape index: {}]   ;;  %s552_s5 = inlined_call_operand.vmem [shape: f32[4,128], index: 5, kind: output, shape index: {}]  }
   0x1   :  { %11 = vsyncpa [#allocation5], 0  ;;  %s458_s18 = smov [#allocation2]   ;;  %s410_s22 = scalar_lea.hbm %s548_s1, 2048 }
   0x2   :  { %s19_s19 = sshll.u32 %s458_s18, 4  ;;  %p411_p0 = scmp.ne.s32.totalorder %s548_s1, %s410_s22  ;;  %s20_s19 = int_to_ptr.vmem [resolvable:$true] %s19_s19 }
   0x3   :  { %p414_p1 = scmp.lt.u32.totalorder %s410_s22, %s548_s1 }
   0x5   :  { %p416_p2 = pnand %p414_p1, %p411_p0 }
   0x7   :  { %419 = shalt.err (!%p416_p2)
}
   0x8   :  { %s420_s27 = scalar_lea.vmem %s20_s19, 2048  ;;  %p425_p4 = scmp.lt.s32.totalorder %s20_s19, %s20_s19 }
   0x9   :  { %p421_p3 = scmp.ne.s32.totalorder %s20_s19, %s420_s27  ;;  %p426_p5 = scmp.lt.s32.totalorder %s420_s27, %s420_s27 }
   0xb   :  { %p427_p6 = por %p426_p5, %p425_p4 }
   0xd   :  { %p428_p7 = pnand %p427_p6, %p421_p3 }
   0xf   :  { %431 = shalt.err (!%p428_p7)
}
  0x10   :  { %s459_s28 = smov 128   ;;  %s460_s29 = smov 8  }
  0x11   :  { %25 = dma.hbm_to_vmem [thread:$0]  %s548_s1, 2048, %s20_s19, [#allocation3], %s459_s28, %s459_s28, %s460_s29  }
  0x12   :  { %s461_s7 = smov [#allocation4]   ;;  %s432_s11 = scalar_lea.hbm %s550_s3, 2048 }
  0x13   :  { %s33_s8 = sshll.u32 %s461_s7, 4  ;;  %p433_p8 = scmp.ne.s32.totalorder %s550_s3, %s432_s11  ;;  %s34_s8 = int_to_ptr.vmem [resolvable:$true] %s33_s8 }
  0x14   :  { %p436_p9 = scmp.lt.u32.totalorder %s432_s11, %s550_s3 }
  0x16   :  { %p438_p10 = pnand %p436_p9, %p433_p8 }
  0x18   :  { %441 = shalt.err (!%p438_p10)
}
  0x19   :  { %s442_s16 = scalar_lea.vmem %s34_s8, 2048  ;;  %p447_p12 = scmp.lt.s32.totalorder %s34_s8, %s34_s8 }
  0x1a   :  { %p443_p11 = scmp.ne.s32.totalorder %s34_s8, %s442_s16  ;;  %p448_p13 = scmp.lt.s32.totalorder %s442_s16, %s442_s16 }
  0x1c   :  { %p449_p0 = por %p448_p13, %p447_p12 }
  0x1e   :  { %p450_p1 = pnand %p449_p0, %p443_p11 }
  0x20   :  { %453 = shalt.err (!%p450_p1)
}
  0x21   :  { %39 = dma.hbm_to_vmem [thread:$0]  %s550_s3, 2048, %s34_s8, [#allocation5], %s459_s28, %s459_s28, %s460_s29  }
  0x22   :  { %454 = dma.done.wait [#allocation3], 2048  }
  0x23   :  { %455 = vsyncadd [#allocation3], 4294965248 }
  0x24   :  { %456 = dma.done.wait [#allocation5], 2048  }
  0x25   :  { %457 = vsyncadd [#allocation5], 4294965248  ;;  %v462_v0 = vmov 0.0|0.0   ;;  %vm463_vm0 = vmmov 0   ;;  %v464_v1 = vmov 0.0   ;;  %v50_v2 = vld [vmem:[#allocation2] sm:$0xff] }
  0x26   :  { %351 = vmatprep.subr.bf16.mxu0 %v462_v0  ;;  %313 = vmatprep.mubr.msk.f32.mxu0 %vm463_vm0, %v464_v1  ;;  %v51_v3 = vld [vmem:[#allocation2 + $0x8] sm:$0xff]  ;;  %v52_v4 = vld [vmem:[#allocation2 + $0x10] sm:$0xff]  ;;  %v53_v6 = vld [vmem:[#allocation2 + $0x18] sm:$0xff] }
  0x27   :  { %375 = vmatprep.subr.bf16.mxu1 %v462_v0  ;;  %348 = vmatprep.mubr.msk.f32.mxu1 %vm463_vm0, %v464_v1  ;;  %v352_v5 = vpack.c.bf16 %v51_v3, %v50_v2  ;;  %v355_v7 = vpack.c.bf16 %v53_v6, %v52_v4  ;;  %v54_v8 = vld [vmem:[#allocation2 + $0x20] sm:$0xff]  ;;  %v55_v9 = vld [vmem:[#allocation2 + $0x28] sm:$0xff]  ;;  %v146_v12 = vld [vmem:[#allocation4 + $0x10] sm:$0xff] }
  0x28   :  { %v144_v10 = vld [vmem:[#allocation4] sm:$0xff]  ;;  %v145_v11 = vld [vmem:[#allocation4 + $0x8] sm:$0xff]  ;;  %v147_v13 = vld [vmem:[#allocation4 + $0x18] sm:$0xff]  ;;  %v358_v14 = vpack.c.bf16 %v55_v9, %v54_v8 }
  0x29   :  { %353 = vmatpush3.bf16.msra.mxu0 %v352_v5  ;;  %v376_v15 = vpack.c.bf16 %v145_v11, %v144_v10  ;;  %v56_v16 = vld [vmem:[#allocation2 + $0x30] sm:$0xff]  ;;  %v57_v17 = vld [vmem:[#allocation2 + $0x38] sm:$0xff]  ;;  %v379_v18 = vpack.c.bf16 %v147_v13, %v146_v12  ;;  %v148_v19 = vld [vmem:[#allocation4 + $0x20] sm:$0xff] }
  0x2a   :  { %354 = vmatprep.subr.bf16.mxu0 %v462_v0  ;;  %v149_v20 = vld [vmem:[#allocation4 + $0x28] sm:$0xff]  ;;  %v361_v21 = vpack.c.bf16 %v57_v17, %v56_v16  ;;  %v58_v22 = vld [vmem:[#allocation2 + $0x40] sm:$0xff]  ;;  %v150_v25 = vld [vmem:[#allocation4 + $0x30] sm:$0xff] }
  0x2b   :  { %377 = vmatpush3.bf16.msra.mxu1 %v376_v15  ;;  %v59_v23 = vld [vmem:[#allocation2 + $0x48] sm:$0xff]  ;;  %v382_v24 = vpack.c.bf16 %v149_v20, %v148_v19  ;;  %v151_v26 = vld [vmem:[#allocation4 + $0x38] sm:$0xff]  ;;  %v60_v28 = vld [vmem:[#allocation2 + $0x50] sm:$0xff] }
  0x2c   :  { %378 = vmatprep.subr.bf16.mxu1 %v462_v0  ;;  %v364_v27 = vpack.c.bf16 %v59_v23, %v58_v22  ;;  %v61_v29 = vld [vmem:[#allocation2 + $0x58] sm:$0xff]  ;;  %v385_v30 = vpack.c.bf16 %v151_v26, %v150_v25  ;;  %v48_v31 = vld [vmem:[%s547_s0] sm:$0xf]  ;;  %v153_v33 = vld [vmem:[#allocation4 + $0x48] sm:$0xff] }
  0x2d   :  { %356 = vmatpush3.bf16.msra.mxu0 %v355_v7  ;;  %v152_v32 = vld [vmem:[#allocation4 + $0x40] sm:$0xff]  ;;  %v367_v34 = vpack.c.bf16 %v61_v29, %v60_v28  ;;  %v63_v36 = vld [vmem:[#allocation2 + $0x68] sm:$0xff]  ;;  %406 = vtanh.f32 %v48_v31  ;;  %v64_v39 = vld [vmem:[#allocation2 + $0x70] sm:$0xff] }
  0x2e   :  { %357 = vmatprep.subr.bf16.mxu0 %v462_v0  ;;  %v62_v35 = vld [vmem:[#allocation2 + $0x60] sm:$0xff]  ;;  %v388_v37 = vpack.c.bf16 %v153_v33, %v152_v32  ;;  %v65_v40 = vld [vmem:[#allocation2 + $0x78] sm:$0xff]  ;;  %v154_v43 = vld [vmem:[#allocation4 + $0x50] sm:$0xff] }
  0x2f   :  { %380 = vmatpush3.bf16.msra.mxu1 %v379_v18  ;;  %v370_v38 = vpack.c.bf16 %v63_v36, %v62_v35  ;;  %v373_v41 = vpack.c.bf16 %v65_v40, %v64_v39  ;;  %v155_v44 = vld [vmem:[#allocation4 + $0x58] sm:$0xff]  ;;  %v156_v46 = vld [vmem:[#allocation4 + $0x60] sm:$0xff]  ;;  %v157_v47 = vld [vmem:[#allocation4 + $0x68] sm:$0xff] }
  0x30   :  { %381 = vmatprep.subr.bf16.mxu1 %v462_v0  ;;  %v391_v45 = vpack.c.bf16 %v155_v44, %v154_v43  ;;  %v394_v48 = vpack.c.bf16 %v157_v47, %v156_v46  ;;  %v158_v49 = vld [vmem:[#allocation4 + $0x70] sm:$0xff]  ;;  %v159_v50 = vld [vmem:[#allocation4 + $0x78] sm:$0xff]  ;;  %v245_v52 = vld [vmem:[%s549_s2] ss:$0 sm:$0xff] }
  0x31   :  { %359 = vmatpush3.bf16.msra.mxu0 %v358_v14  ;;  %v397_v51 = vpack.c.bf16 %v159_v50, %v158_v49  ;;  %v246_v57 = vld [vmem:[%s551_s4] ss:$0 sm:$0xff] }
  0x32   :  { %360 = vmatprep.subr.bf16.mxu0 %v462_v0 }
  0x33   :  { %383 = vmatpush3.bf16.msra.mxu1 %v382_v24 }
  0x34   :  { %384 = vmatprep.subr.bf16.mxu1 %v462_v0 }
  0x35   :  { %362 = vmatpush3.bf16.msra.mxu0 %v361_v21 }
  0x36   :  { %363 = vmatprep.subr.bf16.mxu0 %v462_v0 }
  0x37   :  { %386 = vmatpush3.bf16.msra.mxu1 %v385_v30  ;;  %v407_v42 = vpop.eup %406 }
  0x38   :  { %387 = vmatprep.subr.bf16.mxu1 %v462_v0 }
  0x39   :  { %365 = vmatpush3.bf16.msra.mxu0 %v364_v27 }
  0x3a   :  { %366 = vmatprep.subr.bf16.mxu0 %v462_v0 }
  0x3b   :  { %389 = vmatpush3.bf16.msra.mxu1 %v388_v37 }
  0x3c   :  { %390 = vmatprep.subr.bf16.mxu1 %v462_v0 }
  0x3d   :  { %368 = vmatpush3.bf16.msra.mxu0 %v367_v34 }
  0x3e   :  { %369 = vmatprep.subr.bf16.mxu0 %v462_v0 }
  0x3f   :  { %392 = vmatpush3.bf16.msra.mxu1 %v391_v45 }
  0x40   :  { %393 = vmatprep.subr.bf16.mxu1 %v462_v0 }
  0x41   :  { %371 = vmatpush3.bf16.msra.mxu0 %v370_v38 }
  0x42   :  { %372 = vmatprep.subr.bf16.mxu0 %v462_v0 }
  0x43   :  { %395 = vmatpush3.bf16.msra.mxu1 %v394_v48 }
  0x44   :  { %396 = vmatprep.subr.bf16.mxu1 %v462_v0 }
  0x45   :  { %374 = vmatpush3.bf16.msra.mxu0 %v373_v41 }
  0x47   :  { %398 = vmatpush3.bf16.msra.mxu1 %v397_v51 }
  0x48   :  { %314 = vmatmul.mubr.f32.vlgmr.msra.gmra.mrb[0].mxu0 %v407_v42 }
 0x11b   :  { %v139_v53 = vpop.f32.mrb[0].mxu0 }
 0x11c   :  { %v140_v54 = vadd.f32 %v245_v52, %v139_v53  ;;  %v315_v55 = vpop.f32.mrb[1].mxu0 }
 0x11e   :  { %408 = vtanh.f32 %v140_v54 }
 0x128   :  { %v409_v56 = vpop.eup %408 }
 0x129   :  { %349 = vmatmul.mubr.f32.vlgmr.msra.gmra.mrb[0].mxu1 %v409_v56 }
 0x1fc   :  { %v233_v58 = vpop.f32.mrb[0].mxu1 }
 0x1fd   :  { %v234_v59 = vadd.f32 %v246_v57, %v233_v58  ;;  %v350_v60 = vpop.f32.mrb[1].mxu1 }
 0x1ff   :  { %v237_v61 = vadd.f32 %v234_v59, %v48_v31 }
 0x201   :  { %238 = vst [vmem:[%s552_s5] sm:$0xf] %v237_v61 }
 0x202   :  { %243 = vsyncpa [#allocation3], 1 }
 0x203   :  { %244 = vsyncpa [#allocation5], 1 }

</bundles_post_ra>
